<compile_context>
chip_gen: v5e
topology: v5e:2x2
jax: 0.10.0
libtpu: 0.0.40
codegen_flags: <defaults>
</compile_context>

<pallas_src>
import functools
import math

import jax
import jax.numpy as jnp
from jax import lax
from jax.experimental import pallas as pl
from jax.experimental.pallas import tpu as pltpu


# --------------------------------------------------------------------------- #
# Kernels
# --------------------------------------------------------------------------- #
def _proj_kernel(z_ref, w_ref, q1_ref, rq2_ref, *, d):
    """[Q1 | R | Q2] = Z @ [Wq1/sqrt(m) | Wr | Wq2]; split into two outputs."""
    p = jnp.dot(z_ref[...].astype(w_ref.dtype), w_ref[...],
                preferred_element_type=jnp.float32)          # (tm, 3D) f32
    q1_ref[...] = p[:, :d].astype(q1_ref.dtype)              # (tm, D)
    rq2_ref[...] = p[:, d:].astype(rq2_ref.dtype)            # (tm, 2D) = [R|Q2]


def _hcap_kernel(rq2_ref, w1t_ref, w23t_ref, z_ref, q1_ref, b_ref,
                 h_ref, s_ref, *, d, mm_dtype, approx_recip):
    r = rq2_ref[:, :d]                                       # (N, D)  mm_dtype
    q2 = rq2_ref[:, d:]                                      # (N, D)  mm_dtype

    # logits = (Q1 / sqrt(m)) @ Q2^T — transpose folded into the MXU fetch,
    # 1/sqrt(m) already folded into the projection weight.
    logits = lax.dot_general(q1_ref[...], q2,
                             dimension_numbers=(((1,), (1,)), ((), ())),
                             preferred_element_type=jnp.float32)   # (tm, N)

    # Stable row softmax (f32).
    lmax = jnp.max(logits, axis=1, keepdims=True)
    e = jnp.exp(logits - lmax)
    denom = jnp.sum(e, axis=1, keepdims=True)
    if approx_recip:
        s = e * pl.reciprocal(denom, approx=True)            # EUP slot
    else:
        s = e / denom                                        # exact path
    s_ref[...] = s.astype(s_ref.dtype)

    # Z_cap[i] = sum_j S[i, j] * R[j]  ==  S @ R
    z_cap = jnp.dot(s.astype(mm_dtype), r,
                    preferred_element_type=jnp.float32)      # (tm, D) f32

    # H = relu((Z + Z_cap) @ W1^T + b1) ; H = H @ (W2^T W3^T) + (b2 W3^T + b3)
    x = (z_ref[...] + z_cap).astype(mm_dtype)
    h = jnp.dot(x, w1t_ref[...],
                preferred_element_type=jnp.float32) + b_ref[:, :d]
    h = jnp.maximum(h, 0.0)
    h = jnp.dot(h.astype(mm_dtype), w23t_ref[...],
                preferred_element_type=jnp.float32) + b_ref[:, d:]
    h_ref[...] = h.astype(h_ref.dtype)


# --------------------------------------------------------------------------- #
# Sizing helpers
# --------------------------------------------------------------------------- #
def _vmem_limit_bytes():
    """Generation-aware: 3/4 of physical VMEM (96 MiB v5e/v6e, 48 MiB v7x)."""
    try:
        cap = pltpu.get_tpu_info().vmem_capacity_bytes
    except Exception:
        cap = 128 << 20
    return (cap // 4) * 3


def _pick_row_block(n, d, mm_bytes, s_bytes, vmem_limit):
    """Largest row block that divides N and fits the per-step VMEM budget."""
    def fits(tm):
        resident = n * 2 * d * mm_bytes + 2 * d * d * mm_bytes  # [R|Q2], W1^T, W23^T
        stream_in = 2 * (tm * d * 4 + tm * d * mm_bytes + tm * 2 * d * 4)
        stream_out = 2 * (tm * d * 4 + tm * n * s_bytes)
        temps = 4 * tm * n * 4                                  # softmax f32 temps
        return resident + stream_in + stream_out + temps <= int(vmem_limit * 0.8)

    for tm in (512, 256, 128):                 # prefer >= 256-row tiles (MXU M)
        if n % tm == 0 and fits(tm):
            return tm
    if n % 128 == 0:
        return 128
    return n                                    # small / ragged N: single tile


# --------------------------------------------------------------------------- #
# Wrapper
# --------------------------------------------------------------------------- #
def h_cap_forward(Z, Wr, Wq1, Wq2, W1, W2, W3, b1, b2, b3,
                  *, use_bf16_matmul=True):
    """Forward pass of H_cap.

    Z: (N, D).  Wr/Wq1/Wq2: (D, D) used as Z @ W.  W1/W2/W3: nn.Linear weights
    (out, in).  b1/b2/b3: (N, D) per-row biases.  Returns (H_cap, S, Z).
    """
    N, D = Z.shape
    assert D % 128 == 0, "feature dim must be a multiple of 128 (lane width)"

    mm_dtype = jnp.bfloat16 if use_bf16_matmul else jnp.float32
    mm_bytes = 2 if use_bf16_matmul else 4
    # On the fast path, emit S in bf16: the N^2 writeback is the dominant HBM
    # stream for small D, so halving it matters more than any MXU tweak.
    s_dtype = jnp.bfloat16 if use_bf16_matmul else jnp.float32
    s_bytes = 2 if use_bf16_matmul else 4

    inv_sqrt_m = 1.0 / math.sqrt(float(D))     # m := vec_len = D

    Zf = Z.astype(jnp.float32)

    # Fused projection weight [Wq1/sqrt(m) | Wr | Wq2]; scale folded in f32.
    W_proj = jnp.concatenate(
        [Wq1.astype(jnp.float32) * inv_sqrt_m,
         Wr.astype(jnp.float32),
         Wq2.astype(jnp.float32)], axis=1).astype(mm_dtype)       # (D, 3D)
    W1t = W1.T.astype(mm_dtype)                                    # (D, D)
    # Fold layers 2 and 3 (no nonlinearity in between) — in f32, then cast.
    W23t = (W2.T.astype(jnp.float32)
            @ W3.T.astype(jnp.float32)).astype(mm_dtype)           # (D, D)
    b23 = b2.astype(jnp.float32) @ W3.T.astype(jnp.float32) + b3.astype(jnp.float32)
    b1b23 = jnp.concatenate([b1.astype(jnp.float32), b23], axis=1)  # (N, 2D)

    vmem_limit = _vmem_limit_bytes()
    tm = _pick_row_block(N, D, mm_bytes, s_bytes, vmem_limit)
    n_tiles = N // tm

    cparams = pltpu.CompilerParams(dimension_semantics=("parallel",),
                                   vmem_limit_bytes=vmem_limit)

    def run(single_buffer):
        # Constant-index_map inputs never change block -> single-buffer them.
        const_kw = {"pipeline_mode": pl.Buffered(1)} if single_buffer else {}

        proj = pl.pallas_call(
            functools.partial(_proj_kernel, d=D),
            out_shape=(jax.ShapeDtypeStruct((N, D), mm_dtype),       # Q1/sqrt(m)
                       jax.ShapeDtypeStruct((N, 2 * D), mm_dtype)),  # [R|Q2]
            grid_spec=pltpu.PrefetchScalarGridSpec(
                num_scalar_prefetch=0,
                grid=(n_tiles,),
                in_specs=[
                    pl.BlockSpec((tm, D), lambda i: (i, 0)),               # Z rows
                    pl.BlockSpec((D, 3 * D), lambda i: (0, 0), **const_kw),  # W_proj
                ],
                out_specs=(
                    pl.BlockSpec((tm, D), lambda i: (i, 0)),
                    pl.BlockSpec((tm, 2 * D), lambda i: (i, 0)),
                ),
            ),
            compiler_params=cparams,
        )
        q1, rq2 = proj(Zf, W_proj)

        main = pl.pallas_call(
            functools.partial(_hcap_kernel, d=D, mm_dtype=mm_dtype,
                              approx_recip=use_bf16_matmul),
            out_shape=(jax.ShapeDtypeStruct((N, D), jnp.float32),    # H
                       jax.ShapeDtypeStruct((N, N), s_dtype)),       # S
            grid_spec=pltpu.PrefetchScalarGridSpec(
                num_scalar_prefetch=0,
                grid=(n_tiles,),
                in_specs=[
                    pl.BlockSpec((N, 2 * D), lambda i: (0, 0), **const_kw),  # [R|Q2]
                    pl.BlockSpec((D, D), lambda i: (0, 0), **const_kw),      # W1^T
                    pl.BlockSpec((D, D), lambda i: (0, 0), **const_kw),      # W2^T W3^T
                    pl.BlockSpec((tm, D), lambda i: (i, 0)),                 # Z rows
                    pl.BlockSpec((tm, D), lambda i: (i, 0)),                 # Q1 rows
                    pl.BlockSpec((tm, 2 * D), lambda i: (i, 0)),             # [b1|b23]
                ],
                out_specs=(
                    pl.BlockSpec((tm, D), lambda i: (i, 0)),                 # H
                    pl.BlockSpec((tm, N), lambda i: (i, 0)),                 # S
                ),
            ),
            compiler_params=cparams,
        )
        return main(rq2, W1t, W23t, Zf, q1, b1b23)

    try:
        H, S = run(single_buffer=True)
    except Exception:
        # Fallback for jax builds that reject pl.Buffered(1) single-buffering.
        H, S = run(single_buffer=False)

    return H, S, Z


# --------------------------------------------------------------------------- #
# Demo / correctness check
# --------------------------------------------------------------------------- #
if __name__ == "__main__":
    # Small shapes consistent with the module: n_of_imgs=8, dims=128.
    N = 8     # n_of_imgs
    D = 128   # input_dim = output_dim = vec_len

    key = jax.random.PRNGKey(0)
    ks = jax.random.split(key, 10)
    Z = jax.random.normal(ks[0], (N, D), dtype=jnp.float32)
    Wr = jax.random.normal(ks[1], (D, D), dtype=jnp.float32) * 0.05
    Wq1 = jax.random.normal(ks[2], (D, D), dtype=jnp.float32) * 0.05
    Wq2 = jax.random.normal(ks[3], (D, D), dtype=jnp.float32) * 0.05
    # nn.Linear weights are (out_dim, in_dim)
    W1 = jax.random.normal(ks[4], (D, D), dtype=jnp.float32) * 0.05
    W2 = jax.random.normal(ks[5], (D, D), dtype=jnp.float32) * 0.05
    W3 = jax.random.normal(ks[6], (D, D), dtype=jnp.float32) * 0.05
    b1 = jax.random.normal(ks[7], (N, D), dtype=jnp.float32)
    b2 = jax.random.normal(ks[8], (N, D), dtype=jnp.float32)
    b3 = jax.random.normal(ks[9], (N, D), dtype=jnp.float32)

    # Pure-JAX reference of the exact torch semantics (m = vec_len = D).
    R_ref = Z @ Wr
    logits = (Z @ Wq1) @ (Z @ Wq2).T / jnp.sqrt(jnp.float32(D))
    S_ref = jax.nn.softmax(logits, axis=1)
    Zc = S_ref @ R_ref
    H_ref = jnp.maximum((Z + Zc) @ W1.T + b1, 0.0)
    H_ref = H_ref @ W2.T + b2
    H_ref = H_ref @ W3.T + b3

    # 1) Exact f32 MXU path — tight tolerances (also validates the W2·W3 fold).
    H32, S32, Z_out = h_cap_forward(Z, Wr, Wq1, Wq2, W1, W2, W3, b1, b2, b3,
                                    use_bf16_matmul=False)
    jax.block_until_ready((H32, S32, Z_out))
    assert jnp.allclose(H32, H_ref, atol=1e-3, rtol=1e-3)
    assert jnp.allclose(S32, S_ref, atol=1e-5, rtol=1e-5)
    assert jnp.array_equal(Z_out, Z)

    # 2) bf16 MXU inputs + bf16 S output (fast path) — loose tolerances.
    H16, S16, _ = h_cap_forward(Z, Wr, Wq1, Wq2, W1, W2, W3, b1, b2, b3,
                                use_bf16_matmul=True)
    jax.block_until_ready((H16, S16))
    assert jnp.allclose(H16, H_ref, atol=6e-2, rtol=6e-2)
    assert jnp.allclose(S16.astype(jnp.float32), S_ref, atol=1e-2, rtol=5e-2)

    print("KERNEL_OK")
</pallas_src>

<mosaic_0001>
module attributes {stable_mosaic.version = 11 : i64} {
  func.func @_proj_kernel(%arg0: i32, %arg1: memref<8x128xf32, #tpu.memory_space<vmem>>, %arg2: memref<128x384xf32, #tpu.memory_space<vmem>>, %arg3: memref<8x128xf32, #tpu.memory_space<vmem>>, %arg4: memref<8x256xf32, #tpu.memory_space<vmem>>) attributes {dimension_semantics = [#tpu.dimension_semantics<parallel>], iteration_bounds = array<i64: 1>, scalar_prefetch = 0 : i64, scratch_operands = 0 : i64, tpu.core_type = #tpu.core_type<tc>, window_params = [{transform_indices = @transform_0, window_bounds = array<i64: 8, 128>}, {pipeline_mode = #tpu.pipeline_mode<synchronous>, transform_indices = @transform_1, window_bounds = array<i64: 128, 384>}, {transform_indices = @transform_2, window_bounds = array<i64: 8, 128>}, {transform_indices = @transform_3, window_bounds = array<i64: 8, 256>}]} {
    %c0 = arith.constant 0 : index
    %c0_0 = arith.constant 0 : index
    %0 = vector.load %arg1[%c0, %c0_0] : memref<8x128xf32, #tpu.memory_space<vmem>>, vector<8x128xf32>
    %c0_1 = arith.constant 0 : index
    %c0_2 = arith.constant 0 : index
    %1 = vector.load %arg2[%c0_1, %c0_2] : memref<128x384xf32, #tpu.memory_space<vmem>>, vector<128x384xf32>
    %cst = arith.constant dense<0.000000e+00> : vector<8x384xf32>
    %2 = tpu.matmul %0, %1, %cst {dimension_numbers = #tpu.dot_dimension_numbers<[1], [0], [0], [1], [0, 0, 1, 1], [], []>} : vector<8x128xf32>, vector<128x384xf32>, vector<8x384xf32> -> vector<8x384xf32>
    %3 = vector.extract_strided_slice %2 {offsets = [0, 0], sizes = [8, 128], strides = [1, 1]} : vector<8x384xf32> to vector<8x128xf32>
    %c0_3 = arith.constant 0 : index
    %c0_4 = arith.constant 0 : index
    %4 = vector.load %arg3[%c0_3, %c0_4] : memref<8x128xf32, #tpu.memory_space<vmem>>, vector<8x128xf32>
    tpu.vector_store %arg3[%c0_3, %c0_4], %3 {strides = array<i32>} : memref<8x128xf32, #tpu.memory_space<vmem>>, vector<8x128xf32>,
    %5 = vector.extract_strided_slice %2 {offsets = [0, 128], sizes = [8, 256], strides = [1, 1]} : vector<8x384xf32> to vector<8x256xf32>
    %c0_5 = arith.constant 0 : index
    %c0_6 = arith.constant 0 : index
    %6 = vector.load %arg4[%c0_5, %c0_6] : memref<8x256xf32, #tpu.memory_space<vmem>>, vector<8x256xf32>
    tpu.vector_store %arg4[%c0_5, %c0_6], %5 {strides = array<i32>} : memref<8x256xf32, #tpu.memory_space<vmem>>, vector<8x256xf32>,
    return
  }
  func.func @transform_0(%arg0: i32) -> (i32, i32) {
    %c0_i32 = arith.constant 0 : i32
    %c0_i32_0 = arith.constant 0 : i32
    return %arg0, %c0_i32 : i32, i32
  }
  func.func @transform_1(%arg0: i32) -> (i32, i32) {
    %c0_i32 = arith.constant 0 : i32
    %c0_i32_0 = arith.constant 0 : i32
    %c0_i32_1 = arith.constant 0 : i32
    return %c0_i32, %c0_i32_0 : i32, i32
  }
  func.func @transform_2(%arg0: i32) -> (i32, i32) {
    %c0_i32 = arith.constant 0 : i32
    %c0_i32_0 = arith.constant 0 : i32
    return %arg0, %c0_i32 : i32, i32
  }
  func.func @transform_3(%arg0: i32) -> (i32, i32) {
    %c0_i32 = arith.constant 0 : i32
    %c0_i32_0 = arith.constant 0 : i32
    return %arg0, %c0_i32 : i32, i32
  }
}

module attributes {stable_mosaic.version = 11 : i64} {
  func.func @_proj_kernel(%arg0: i32, %arg1: memref<8x128xf32, #tpu.memory_space<vmem>>, %arg2: memref<128x384xf32, #tpu.memory_space<vmem>>, %arg3: memref<8x128xf32, #tpu.memory_space<vmem>>, %arg4: memref<8x256xf32, #tpu.memory_space<vmem>>) attributes {dimension_semantics = [#tpu.dimension_semantics<parallel>], iteration_bounds = array<i64: 1>, scalar_prefetch = 0 : i64, scratch_operands = 0 : i64, tpu.core_type = #tpu.core_type<tc>, window_params = [{transform_indices = @transform_0, window_bounds = array<i64: 8, 128>}, {pipeline_mode = #tpu.pipeline_mode<synchronous>, transform_indices = @transform_1, window_bounds = array<i64: 128, 384>}, {transform_indices = @transform_2, window_bounds = array<i64: 8, 128>}, {transform_indices = @transform_3, window_bounds = array<i64: 8, 256>}]} {
    %c0 = arith.constant 0 : index
    %c0_0 = arith.constant 0 : index
    %0 = vector.load %arg1[%c0, %c0_0] : memref<8x128xf32, #tpu.memory_space<vmem>>, vector<8x128xf32>
    %c0_1 = arith.constant 0 : index
    %c0_2 = arith.constant 0 : index
    %1 = vector.load %arg2[%c0_1, %c0_2] : memref<128x384xf32, #tpu.memory_space<vmem>>, vector<128x384xf32>
    %cst = arith.constant dense<0.000000e+00> : vector<8x384xf32>
    %2 = tpu.matmul %0, %1, %cst {dimension_numbers = #tpu.dot_dimension_numbers<[1], [0], [0], [1], [0, 0, 1, 1], [], []>} : vector<8x128xf32>, vector<128x384xf32>, vector<8x384xf32> -> vector<8x384xf32>
    %3 = vector.extract_strided_slice %2 {offsets = [0, 0], sizes = [8, 128], strides = [1, 1]} : vector<8x384xf32> to vector<8x128xf32>
    %c0_3 = arith.constant 0 : index
    %c0_4 = arith.constant 0 : index
    %4 = vector.load %arg3[%c0_3, %c0_4] : memref<8x128xf32, #tpu.memory_space<vmem>>, vector<8x128xf32>
    tpu.vector_store %arg3[%c0_3, %c0_4], %3 {strides = array<i32>} : memref<8x128xf32, #tpu.memory_space<vmem>>, vector<8x128xf32>,
    %5 = vector.extract_strided_slice %2 {offsets = [0, 128], sizes = [8, 256], strides = [1, 1]} : vector<8x384xf32> to vector<8x256xf32>
    %c0_5 = arith.constant 0 : index
    %c0_6 = arith.constant 0 : index
    %6 = vector.load %arg4[%c0_5, %c0_6] : memref<8x256xf32, #tpu.memory_space<vmem>>, vector<8x256xf32>
    tpu.vector_store %arg4[%c0_5, %c0_6], %5 {strides = array<i32>} : memref<8x256xf32, #tpu.memory_space<vmem>>, vector<8x256xf32>,
    return
  }
  func.func @transform_0(%arg0: i32) -> (i32, i32) {
    %c0_i32 = arith.constant 0 : i32
    %c0_i32_0 = arith.constant 0 : i32
    return %arg0, %c0_i32 : i32, i32
  }
  func.func @transform_1(%arg0: i32) -> (i32, i32) {
    %c0_i32 = arith.constant 0 : i32
    %c0_i32_0 = arith.constant 0 : i32
    %c0_i32_1 = arith.constant 0 : i32
    return %c0_i32, %c0_i32_0 : i32, i32
  }
  func.func @transform_2(%arg0: i32) -> (i32, i32) {
    %c0_i32 = arith.constant 0 : i32
    %c0_i32_0 = arith.constant 0 : i32
    return %arg0, %c0_i32 : i32, i32
  }
  func.func @transform_3(%arg0: i32) -> (i32, i32) {
    %c0_i32 = arith.constant 0 : i32
    %c0_i32_0 = arith.constant 0 : i32
    return %arg0, %c0_i32 : i32, i32
  }
}

</mosaic_0001>

<bundles_post_ra>
// kernel: tpu_custom_call.1
= control target key start
LH: loop header
LB: loop body
LE: loop exit
PB: predicated region body
PF: predicated region fallthrough
CT: control target
= control target key end

     0   :  { %9 = vsyncpa [#allocation3], 0  ;;  %s339_s0 = inlined_call_operand.hbm [shape: f32[8,128], index: 0, kind: input, shape index: {}]   ;;  %s340_s1 = inlined_call_operand.hbm [shape: f32[128,384], index: 1, kind: input, shape index: {}]   ;;  %s341_s2 = inlined_call_operand.hbm [shape: f32[8,128], index: 2, kind: output, shape index: {0}]   ;;  %s342_s3 = inlined_call_operand.hbm [shape: f32[8,256], index: 3, kind: output, shape index: {1}]  }
   0x1   :  { %10 = vsyncpa [#allocation6], 0 }
   0x2   :  { %11 = vsyncpa [#allocation4], 0 }
   0x3   :  { %12 = vsyncpa [#allocation9], 0  ;;  %s18_s14 = sshll.u32 %s339_s0, 4  ;;  %s301_s15 = smov [#allocation2]   ;;  %s19_s14 = int_to_ptr.hbm [resolvable:$true] %s18_s14 }
   0x4   :  { %s20_s16 = sshll.u32 %s301_s15, 4  ;;  %s28_s19 = sshll.u32 %s340_s1, 4  ;;  %s21_s16 = int_to_ptr.vmem [resolvable:$true] %s20_s16  ;;  %s29_s19 = int_to_ptr.hbm [resolvable:$true] %s28_s19 }
   0x5   :  { %23 = dma.hbm_to_vmem [thread:$0]  %s19_s14, 128, %s21_s16, [#allocation3]  }
   0x6   :  { %s302_s20 = smov [#allocation5]   ;;  %s303_s22 = smov 384  }
   0x7   :  { %s30_s21 = sshll.u32 %s302_s20, 4  ;;  %s304_s23 = smov 24   ;;  %s31_s21 = int_to_ptr.vmem [resolvable:$true] %s30_s21 }
   0x8   :  { %36 = dma.hbm_to_vmem [thread:$0]  %s29_s19, 6144, %s31_s21, [#allocation6], %s303_s22, %s303_s22, %s304_s23  }
   0x9   :  { %293 = dma.done.wait [#allocation3], 128  }
   0xa   :  { %294 = vsyncadd [#allocation3], 4294967168 }
   0xb   :  { %295 = dma.done.wait [#allocation6], 6144  }
   0xc   :  { %296 = vsyncadd [#allocation6], 4294961152  ;;  %v93_v0 = vld [vmem:[#allocation5 + $0x178] sm:$0xff]  ;;  %v90_v1 = vld [vmem:[#allocation5 + $0x160] sm:$0xff]  ;;  %s305_s0 = smov [#allocation7]   ;;  %s164_s26 = sshll.u32 %s341_s2, 4  ;;  %s165_s26 = int_to_ptr.hbm [resolvable:$true] %s164_s26 }
   0xd   :  { %134 = vmatpush.msra.mxu2 %v93_v0  ;;  %v91_v2 = vld [vmem:[#allocation5 + $0x168] sm:$0xff]  ;;  %v92_v3 = vld [vmem:[#allocation5 + $0x170] sm:$0xff]  ;;  %v89_v6 = vld [vmem:[#allocation5 + $0x158] sm:$0xff]  ;;  %s162_s1 = sshll.u32 %s305_s0, 4  ;;  %s306_s27 = smov [#allocation8]   ;;  %s163_s1 = int_to_ptr.vmem [resolvable:$true] %s162_s1 }
   0xe   :  { %v87_v4 = vld [vmem:[#allocation5 + $0x148] sm:$0xff]  ;;  %94 = vmatpush.msra.mxu0 %v91_v2  ;;  %114 = vmatpush.msra.mxu1 %v92_v3  ;;  %v88_v5 = vld [vmem:[#allocation5 + $0x150] sm:$0xff]  ;;  %v85_v7 = vld [vmem:[#allocation5 + $0x138] sm:$0xff]  ;;  %s173_s28 = sshll.u32 %s306_s27, 4  ;;  %s175_s4 = sshll.u32 %s342_s3, 4  ;;  %s174_s28 = int_to_ptr.vmem [resolvable:$true] %s173_s28  ;;  %s176_s4 = int_to_ptr.hbm [resolvable:$true] %s175_s4 }
   0xf   :  { %135 = vmatpush.msra.mxu2 %v90_v1  ;;  %v86_v8 = vld [vmem:[#allocation5 + $0x140] sm:$0xff]  ;;  %v84_v9 = vld [vmem:[#allocation5 + $0x130] sm:$0xff]  ;;  %v83_v11 = vld [vmem:[#allocation5 + $0x128] sm:$0xff] }
  0x10   :  { %95 = vmatpush.msra.mxu0 %v88_v5  ;;  %115 = vmatpush.msra.mxu1 %v89_v6  ;;  %v82_v10 = vld [vmem:[#allocation5 + $0x120] sm:$0xff]  ;;  %v81_v12 = vld [vmem:[#allocation5 + $0x118] sm:$0xff]  ;;  %v79_v13 = vld [vmem:[#allocation5 + $0x108] sm:$0xff] }
  0x11   :  { %136 = vmatpush.msra.mxu2 %v87_v4  ;;  %v80_v14 = vld [vmem:[#allocation5 + $0x110] sm:$0xff]  ;;  %v78_v15 = vld [vmem:[#allocation5 + $0x100] sm:$0xff]  ;;  %v77_v17 = vld [vmem:[#allocation5 + $0xf8] sm:$0xff] }
  0x12   :  { %96 = vmatpush.msra.mxu0 %v85_v7  ;;  %116 = vmatpush.msra.mxu1 %v86_v8  ;;  %v76_v16 = vld [vmem:[#allocation5 + $0xf0] sm:$0xff]  ;;  %v75_v18 = vld [vmem:[#allocation5 + $0xe8] sm:$0xff]  ;;  %v73_v19 = vld [vmem:[#allocation5 + $0xd8] sm:$0xff] }
  0x13   :  { %137 = vmatpush.msra.mxu2 %v84_v9  ;;  %v74_v20 = vld [vmem:[#allocation5 + $0xe0] sm:$0xff]  ;;  %v72_v21 = vld [vmem:[#allocation5 + $0xd0] sm:$0xff]  ;;  %v71_v23 = vld [vmem:[#allocation5 + $0xc8] sm:$0xff] }
  0x14   :  { %97 = vmatpush.msra.mxu0 %v82_v10  ;;  %117 = vmatpush.msra.mxu1 %v83_v11  ;;  %v70_v22 = vld [vmem:[#allocation5 + $0xc0] sm:$0xff]  ;;  %v69_v24 = vld [vmem:[#allocation5 + $0xb8] sm:$0xff]  ;;  %v67_v25 = vld [vmem:[#allocation5 + $0xa8] sm:$0xff] }
  0x15   :  { %138 = vmatpush.msra.mxu2 %v81_v12  ;;  %v68_v26 = vld [vmem:[#allocation5 + $0xb0] sm:$0xff]  ;;  %v66_v27 = vld [vmem:[#allocation5 + $0xa0] sm:$0xff]  ;;  %v65_v29 = vld [vmem:[#allocation5 + $0x98] sm:$0xff] }
  0x16   :  { %98 = vmatpush.msra.mxu0 %v79_v13  ;;  %118 = vmatpush.msra.mxu1 %v80_v14  ;;  %v64_v28 = vld [vmem:[#allocation5 + $0x90] sm:$0xff]  ;;  %v63_v30 = vld [vmem:[#allocation5 + $0x88] sm:$0xff]  ;;  %v61_v31 = vld [vmem:[#allocation5 + $0x78] sm:$0xff] }
  0x17   :  { %139 = vmatpush.msra.mxu2 %v78_v15  ;;  %v62_v32 = vld [vmem:[#allocation5 + $0x80] sm:$0xff]  ;;  %v60_v33 = vld [vmem:[#allocation5 + $0x70] sm:$0xff]  ;;  %v59_v35 = vld [vmem:[#allocation5 + $0x68] sm:$0xff] }
  0x18   :  { %99 = vmatpush.msra.mxu0 %v76_v16  ;;  %119 = vmatpush.msra.mxu1 %v77_v17  ;;  %v58_v34 = vld [vmem:[#allocation5 + $0x60] sm:$0xff]  ;;  %v57_v36 = vld [vmem:[#allocation5 + $0x58] sm:$0xff]  ;;  %v55_v37 = vld [vmem:[#allocation5 + $0x48] sm:$0xff] }
  0x19   :  { %140 = vmatpush.msra.mxu2 %v75_v18  ;;  %v56_v38 = vld [vmem:[#allocation5 + $0x50] sm:$0xff]  ;;  %v54_v39 = vld [vmem:[#allocation5 + $0x40] sm:$0xff]  ;;  %v53_v41 = vld [vmem:[#allocation5 + $0x38] sm:$0xff] }
  0x1a   :  { %100 = vmatpush.msra.mxu0 %v73_v19  ;;  %120 = vmatpush.msra.mxu1 %v74_v20  ;;  %v52_v40 = vld [vmem:[#allocation5 + $0x30] sm:$0xff]  ;;  %v51_v42 = vld [vmem:[#allocation5 + $0x28] sm:$0xff]  ;;  %v49_v43 = vld [vmem:[#allocation5 + $0x18] sm:$0xff] }
  0x1b   :  { %141 = vmatpush.msra.mxu2 %v72_v21  ;;  %v50_v44 = vld [vmem:[#allocation5 + $0x20] sm:$0xff]  ;;  %v48_v45 = vld [vmem:[#allocation5 + $0x10] sm:$0xff]  ;;  %v45_v46 = vld [vmem:[#allocation2] sm:$0xff] }
  0x1c   :  { %101 = vmatpush.msra.mxu0 %v70_v22  ;;  %121 = vmatpush.msra.mxu1 %v71_v23  ;;  %v46_v47 = vld [vmem:[#allocation5] sm:$0xff]  ;;  %v47_v48 = vld [vmem:[#allocation5 + $0x8] sm:$0xff] }
  0x1d   :  { %142 = vmatpush.msra.mxu2 %v69_v24 }
  0x1e   :  { %102 = vmatpush.msra.mxu0 %v67_v25  ;;  %122 = vmatpush.msra.mxu1 %v68_v26 }
  0x1f   :  { %143 = vmatpush.msra.mxu2 %v66_v27 }
  0x20   :  { %103 = vmatpush.msra.mxu0 %v64_v28  ;;  %123 = vmatpush.msra.mxu1 %v65_v29 }
  0x21   :  { %144 = vmatpush.msra.mxu2 %v63_v30 }
  0x22   :  { %104 = vmatpush.msra.mxu0 %v61_v31  ;;  %124 = vmatpush.msra.mxu1 %v62_v32 }
  0x23   :  { %145 = vmatpush.msra.mxu2 %v60_v33 }
  0x24   :  { %105 = vmatpush.msra.mxu0 %v58_v34  ;;  %125 = vmatpush.msra.mxu1 %v59_v35 }
  0x25   :  { %146 = vmatpush.msra.mxu2 %v57_v36 }
  0x26   :  { %106 = vmatpush.msra.mxu0 %v55_v37  ;;  %126 = vmatpush.msra.mxu1 %v56_v38 }
  0x27   :  { %147 = vmatpush.msra.mxu2 %v54_v39 }
  0x28   :  { %107 = vmatpush.msra.mxu0 %v52_v40  ;;  %127 = vmatpush.msra.mxu1 %v53_v41 }
  0x29   :  { %148 = vmatpush.msra.mxu2 %v51_v42 }
  0x2a   :  { %108 = vmatpush.msra.mxu0 %v49_v43  ;;  %128 = vmatpush.msra.mxu1 %v50_v44 }
  0x2b   :  { %149 = vmatpush.msra.mxu2 %v48_v45 }
  0x2c   :  { %150 = vmatmul.f32.vlgmr.msra.gmra.mxu2 %v45_v46  ;;  %109 = vmatpush.msra.mxu0 %v46_v47 }
  0x2d   :  { %129 = vmatpush.msra.mxu1 %v47_v48  ;;  %110 = vmatmul.f32.vlgmr.msra.gmra.mxu0 %v45_v46 }
  0x2e   :  { %130 = vmatmul.f32.vlgmr.msra.gmra.mxu1 %v45_v46 }
  0xaa   :  { %v111_v49 = vpop.f32.mrf.mxu0 }
  0xab   :  { %154 = vst [vmem:[#allocation7] sm:$0xff] %v111_v49  ;;  %v131_v50 = vpop.f32.mrf.mxu1 }
  0xac   :  { %155 = vst [vmem:[#allocation8] sm:$0xff] %v131_v50  ;;  %167 = dma.vmem_to_hbm [thread:$0]  %s163_s1, 128, %s165_s26, [#allocation4]  }
  0xaf   :  { %v151_v51 = vpop.f32.mrf.mxu2 }
  0xb0   :  { %156 = vst [vmem:[#allocation8 + $0x8] sm:$0xff] %v151_v51 }
  0xb1   :  { %178 = dma.vmem_to_hbm [thread:$0]  %s174_s28, 256, %s176_s4, [#allocation9]  }
  0xb2   :  { %297 = dma.done.wait [#allocation4], 128  }
  0xb3   :  { %298 = vsyncadd [#allocation4], 4294967168 }
  0xb4   :  { %299 = dma.done.wait [#allocation9], 256  }
  0xb5   :  { %300 = vsyncadd [#allocation9], 4294967040 }
  0xb6   :  { %187 = vsyncpa [#allocation3], 1 }
  0xb7   :  { %188 = vsyncpa [#allocation6], 1 }
  0xb8   :  { %189 = vsyncpa [#allocation4], 1 }
  0xb9   :  { %190 = vsyncpa [#allocation9], 1 }

// kernel: tpu_custom_call.1
= control target key start
LH: loop header
LB: loop body
LE: loop exit
PB: predicated region body
PF: predicated region fallthrough
CT: control target
= control target key end

     0   :  { %9 = vsyncpa [#allocation3], 0  ;;  %s339_s0 = inlined_call_operand.hbm [shape: f32[8,128], index: 0, kind: input, shape index: {}]   ;;  %s340_s1 = inlined_call_operand.hbm [shape: f32[128,384], index: 1, kind: input, shape index: {}]   ;;  %s341_s2 = inlined_call_operand.hbm [shape: f32[8,128], index: 2, kind: output, shape index: {0}]   ;;  %s342_s3 = inlined_call_operand.hbm [shape: f32[8,256], index: 3, kind: output, shape index: {1}]  }
   0x1   :  { %10 = vsyncpa [#allocation6], 0 }
   0x2   :  { %11 = vsyncpa [#allocation4], 0 }
   0x3   :  { %12 = vsyncpa [#allocation9], 0  ;;  %s18_s14 = sshll.u32 %s339_s0, 4  ;;  %s301_s15 = smov [#allocation2]   ;;  %s19_s14 = int_to_ptr.hbm [resolvable:$true] %s18_s14 }
   0x4   :  { %s20_s16 = sshll.u32 %s301_s15, 4  ;;  %s28_s19 = sshll.u32 %s340_s1, 4  ;;  %s21_s16 = int_to_ptr.vmem [resolvable:$true] %s20_s16  ;;  %s29_s19 = int_to_ptr.hbm [resolvable:$true] %s28_s19 }
   0x5   :  { %23 = dma.hbm_to_vmem [thread:$0]  %s19_s14, 128, %s21_s16, [#allocation3]  }
   0x6   :  { %s302_s20 = smov [#allocation5]   ;;  %s303_s22 = smov 384  }
   0x7   :  { %s30_s21 = sshll.u32 %s302_s20, 4  ;;  %s304_s23 = smov 24   ;;  %s31_s21 = int_to_ptr.vmem [resolvable:$true] %s30_s21 }
   0x8   :  { %36 = dma.hbm_to_vmem [thread:$0]  %s29_s19, 6144, %s31_s21, [#allocation6], %s303_s22, %s303_s22, %s304_s23  }
   0x9   :  { %293 = dma.done.wait [#allocation3], 128  }
   0xa   :  { %294 = vsyncadd [#allocation3], 4294967168 }
   0xb   :  { %295 = dma.done.wait [#allocation6], 6144  }
   0xc   :  { %296 = vsyncadd [#allocation6], 4294961152  ;;  %v93_v0 = vld [vmem:[#allocation5 + $0x178] sm:$0xff]  ;;  %v90_v1 = vld [vmem:[#allocation5 + $0x160] sm:$0xff]  ;;  %s305_s0 = smov [#allocation7]   ;;  %s164_s26 = sshll.u32 %s341_s2, 4  ;;  %s165_s26 = int_to_ptr.hbm [resolvable:$true] %s164_s26 }
   0xd   :  { %134 = vmatpush.msra.mxu2 %v93_v0  ;;  %v91_v2 = vld [vmem:[#allocation5 + $0x168] sm:$0xff]  ;;  %v92_v3 = vld [vmem:[#allocation5 + $0x170] sm:$0xff]  ;;  %v89_v6 = vld [vmem:[#allocation5 + $0x158] sm:$0xff]  ;;  %s162_s1 = sshll.u32 %s305_s0, 4  ;;  %s306_s27 = smov [#allocation8]   ;;  %s163_s1 = int_to_ptr.vmem [resolvable:$true] %s162_s1 }
   0xe   :  { %v87_v4 = vld [vmem:[#allocation5 + $0x148] sm:$0xff]  ;;  %94 = vmatpush.msra.mxu0 %v91_v2  ;;  %114 = vmatpush.msra.mxu1 %v92_v3  ;;  %v88_v5 = vld [vmem:[#allocation5 + $0x150] sm:$0xff]  ;;  %v85_v7 = vld [vmem:[#allocation5 + $0x138] sm:$0xff]  ;;  %s173_s28 = sshll.u32 %s306_s27, 4  ;;  %s175_s4 = sshll.u32 %s342_s3, 4  ;;  %s174_s28 = int_to_ptr.vmem [resolvable:$true] %s173_s28  ;;  %s176_s4 = int_to_ptr.hbm [resolvable:$true] %s175_s4 }
   0xf   :  { %135 = vmatpush.msra.mxu2 %v90_v1  ;;  %v86_v8 = vld [vmem:[#allocation5 + $0x140] sm:$0xff]  ;;  %v84_v9 = vld [vmem:[#allocation5 + $0x130] sm:$0xff]  ;;  %v83_v11 = vld [vmem:[#allocation5 + $0x128] sm:$0xff] }
  0x10   :  { %95 = vmatpush.msra.mxu0 %v88_v5  ;;  %115 = vmatpush.msra.mxu1 %v89_v6  ;;  %v82_v10 = vld [vmem:[#allocation5 + $0x120] sm:$0xff]  ;;  %v81_v12 = vld [vmem:[#allocation5 + $0x118] sm:$0xff]  ;;  %v79_v13 = vld [vmem:[#allocation5 + $0x108] sm:$0xff] }
  0x11   :  { %136 = vmatpush.msra.mxu2 %v87_v4  ;;  %v80_v14 = vld [vmem:[#allocation5 + $0x110] sm:$0xff]  ;;  %v78_v15 = vld [vmem:[#allocation5 + $0x100] sm:$0xff]  ;;  %v77_v17 = vld [vmem:[#allocation5 + $0xf8] sm:$0xff] }
  0x12   :  { %96 = vmatpush.msra.mxu0 %v85_v7  ;;  %116 = vmatpush.msra.mxu1 %v86_v8  ;;  %v76_v16 = vld [vmem:[#allocation5 + $0xf0] sm:$0xff]  ;;  %v75_v18 = vld [vmem:[#allocation5 + $0xe8] sm:$0xff]  ;;  %v73_v19 = vld [vmem:[#allocation5 + $0xd8] sm:$0xff] }
  0x13   :  { %137 = vmatpush.msra.mxu2 %v84_v9  ;;  %v74_v20 = vld [vmem:[#allocation5 + $0xe0] sm:$0xff]  ;;  %v72_v21 = vld [vmem:[#allocation5 + $0xd0] sm:$0xff]  ;;  %v71_v23 = vld [vmem:[#allocation5 + $0xc8] sm:$0xff] }
  0x14   :  { %97 = vmatpush.msra.mxu0 %v82_v10  ;;  %117 = vmatpush.msra.mxu1 %v83_v11  ;;  %v70_v22 = vld [vmem:[#allocation5 + $0xc0] sm:$0xff]  ;;  %v69_v24 = vld [vmem:[#allocation5 + $0xb8] sm:$0xff]  ;;  %v67_v25 = vld [vmem:[#allocation5 + $0xa8] sm:$0xff] }
  0x15   :  { %138 = vmatpush.msra.mxu2 %v81_v12  ;;  %v68_v26 = vld [vmem:[#allocation5 + $0xb0] sm:$0xff]  ;;  %v66_v27 = vld [vmem:[#allocation5 + $0xa0] sm:$0xff]  ;;  %v65_v29 = vld [vmem:[#allocation5 + $0x98] sm:$0xff] }
  0x16   :  { %98 = vmatpush.msra.mxu0 %v79_v13  ;;  %118 = vmatpush.msra.mxu1 %v80_v14  ;;  %v64_v28 = vld [vmem:[#allocation5 + $0x90] sm:$0xff]  ;;  %v63_v30 = vld [vmem:[#allocation5 + $0x88] sm:$0xff]  ;;  %v61_v31 = vld [vmem:[#allocation5 + $0x78] sm:$0xff] }
  0x17   :  { %139 = vmatpush.msra.mxu2 %v78_v15  ;;  %v62_v32 = vld [vmem:[#allocation5 + $0x80] sm:$0xff]  ;;  %v60_v33 = vld [vmem:[#allocation5 + $0x70] sm:$0xff]  ;;  %v59_v35 = vld [vmem:[#allocation5 + $0x68] sm:$0xff] }
  0x18   :  { %99 = vmatpush.msra.mxu0 %v76_v16  ;;  %119 = vmatpush.msra.mxu1 %v77_v17  ;;  %v58_v34 = vld [vmem:[#allocation5 + $0x60] sm:$0xff]  ;;  %v57_v36 = vld [vmem:[#allocation5 + $0x58] sm:$0xff]  ;;  %v55_v37 = vld [vmem:[#allocation5 + $0x48] sm:$0xff] }
  0x19   :  { %140 = vmatpush.msra.mxu2 %v75_v18  ;;  %v56_v38 = vld [vmem:[#allocation5 + $0x50] sm:$0xff]  ;;  %v54_v39 = vld [vmem:[#allocation5 + $0x40] sm:$0xff]  ;;  %v53_v41 = vld [vmem:[#allocation5 + $0x38] sm:$0xff] }
  0x1a   :  { %100 = vmatpush.msra.mxu0 %v73_v19  ;;  %120 = vmatpush.msra.mxu1 %v74_v20  ;;  %v52_v40 = vld [vmem:[#allocation5 + $0x30] sm:$0xff]  ;;  %v51_v42 = vld [vmem:[#allocation5 + $0x28] sm:$0xff]  ;;  %v49_v43 = vld [vmem:[#allocation5 + $0x18] sm:$0xff] }
  0x1b   :  { %141 = vmatpush.msra.mxu2 %v72_v21  ;;  %v50_v44 = vld [vmem:[#allocation5 + $0x20] sm:$0xff]  ;;  %v48_v45 = vld [vmem:[#allocation5 + $0x10] sm:$0xff]  ;;  %v45_v46 = vld [vmem:[#allocation2] sm:$0xff] }
  0x1c   :  { %101 = vmatpush.msra.mxu0 %v70_v22  ;;  %121 = vmatpush.msra.mxu1 %v71_v23  ;;  %v46_v47 = vld [vmem:[#allocation5] sm:$0xff]  ;;  %v47_v48 = vld [vmem:[#allocation5 + $0x8] sm:$0xff] }
  0x1d   :  { %142 = vmatpush.msra.mxu2 %v69_v24 }
  0x1e   :  { %102 = vmatpush.msra.mxu0 %v67_v25  ;;  %122 = vmatpush.msra.mxu1 %v68_v26 }
  0x1f   :  { %143 = vmatpush.msra.mxu2 %v66_v27 }
  0x20   :  { %103 = vmatpush.msra.mxu0 %v64_v28  ;;  %123 = vmatpush.msra.mxu1 %v65_v29 }
  0x21   :  { %144 = vmatpush.msra.mxu2 %v63_v30 }
  0x22   :  { %104 = vmatpush.msra.mxu0 %v61_v31  ;;  %124 = vmatpush.msra.mxu1 %v62_v32 }
  0x23   :  { %145 = vmatpush.msra.mxu2 %v60_v33 }
  0x24   :  { %105 = vmatpush.msra.mxu0 %v58_v34  ;;  %125 = vmatpush.msra.mxu1 %v59_v35 }
  0x25   :  { %146 = vmatpush.msra.mxu2 %v57_v36 }
  0x26   :  { %106 = vmatpush.msra.mxu0 %v55_v37  ;;  %126 = vmatpush.msra.mxu1 %v56_v38 }
  0x27   :  { %147 = vmatpush.msra.mxu2 %v54_v39 }
  0x28   :  { %107 = vmatpush.msra.mxu0 %v52_v40  ;;  %127 = vmatpush.msra.mxu1 %v53_v41 }
  0x29   :  { %148 = vmatpush.msra.mxu2 %v51_v42 }
  0x2a   :  { %108 = vmatpush.msra.mxu0 %v49_v43  ;;  %128 = vmatpush.msra.mxu1 %v50_v44 }
  0x2b   :  { %149 = vmatpush.msra.mxu2 %v48_v45 }
  0x2c   :  { %150 = vmatmul.f32.vlgmr.msra.gmra.mxu2 %v45_v46  ;;  %109 = vmatpush.msra.mxu0 %v46_v47 }
  0x2d   :  { %129 = vmatpush.msra.mxu1 %v47_v48  ;;  %110 = vmatmul.f32.vlgmr.msra.gmra.mxu0 %v45_v46 }
  0x2e   :  { %130 = vmatmul.f32.vlgmr.msra.gmra.mxu1 %v45_v46 }
  0xaa   :  { %v111_v49 = vpop.f32.mrf.mxu0 }
  0xab   :  { %154 = vst [vmem:[#allocation7] sm:$0xff] %v111_v49  ;;  %v131_v50 = vpop.f32.mrf.mxu1 }
  0xac   :  { %155 = vst [vmem:[#allocation8] sm:$0xff] %v131_v50  ;;  %167 = dma.vmem_to_hbm [thread:$0]  %s163_s1, 128, %s165_s26, [#allocation4]  }
  0xaf   :  { %v151_v51 = vpop.f32.mrf.mxu2 }
  0xb0   :  { %156 = vst [vmem:[#allocation8 + $0x8] sm:$0xff] %v151_v51 }
  0xb1   :  { %178 = dma.vmem_to_hbm [thread:$0]  %s174_s28, 256, %s176_s4, [#allocation9]  }
  0xb2   :  { %297 = dma.done.wait [#allocation4], 128  }
  0xb3   :  { %298 = vsyncadd [#allocation4], 4294967168 }
  0xb4   :  { %299 = dma.done.wait [#allocation9], 256  }
  0xb5   :  { %300 = vsyncadd [#allocation9], 4294967040 }
  0xb6   :  { %187 = vsyncpa [#allocation3], 1 }
  0xb7   :  { %188 = vsyncpa [#allocation6], 1 }
  0xb8   :  { %189 = vsyncpa [#allocation4], 1 }
  0xb9   :  { %190 = vsyncpa [#allocation9], 1 }

</bundles_post_ra>
